<compile_context>
chip_gen: v6e
topology: v6e:2x2x1
jax: 0.10.0
libtpu: 0.0.40
codegen_flags: <defaults>
</compile_context>

<pallas_src>
import jax
import jax.numpy as jnp
import numpy as np
from jax.experimental import pallas as pl
from jax.experimental.pallas import tpu as pltpu

_TIME_BUCKET_INCR = 0.301  # bucketization_fn(x) = floor(log(clamp(|x|,1)) / 0.301)


def _bias_kernel(ts_w_ref, tn_ref, tp_ref, rel_pos_ref, out_ref):
    """One (TM, N) row-tile of the bias for one batch element.

    ts_w_ref:    (K,)        float32 in SMEM (K = num_buckets + 1)
    tn_ref:      (1, TM, 1)  int32   -> ext_timestamps[b, m*TM+1 : m*TM+TM+1]
    tp_ref:      (1, 1, N)   int32   -> ext_timestamps[b, :N]
    rel_pos_ref: (TM, N)     float32 -> precomputed Toeplitz pos_w[j - i + N - 1]
    out_ref:     (1, TM, N)  out_dtype
    """
    K = ts_w_ref.shape[0]

    tn = tn_ref[0]                       # (TM, 1)
    tp = tp_ref[0]                       # (1, N)
    diff = tn - tp                       # (TM, N): ext[i+1] - ext[j]

    # bucketization_fn + clamp(min=0, max=num_buckets)
    mag = jnp.maximum(jnp.abs(diff).astype(jnp.float32), 1.0)
    bucket = jnp.floor(jnp.log(mag) / _TIME_BUCKET_INCR).astype(jnp.int32)
    bucket = jnp.clip(bucket, 0, K - 1)  # (TM, N)

    # K-way select from SMEM table (K is a small static Python int -> unrolled).
    rel_ts = jnp.zeros(bucket.shape, jnp.float32)
    for k in range(K):
        rel_ts = jnp.where(bucket == k, ts_w_ref[k], rel_ts)

    out_ref[0] = (rel_pos_ref[...] + rel_ts).astype(out_ref.dtype)


def _pick_tile_m(N, requested=None):
    if requested is not None:
        assert N % requested == 0, "tile_m must divide max_seq_len"
        return requested
    # Largest row tile <= 256 that divides N (keeps the double-buffered (TM, N)
    # output + rel_pos tiles well under the default scoped-VMEM limit on
    # v5e/v6e/v7x); fall back to N itself for tiny sequences.
    for tm in (256, 128, 64, 32, 16, 8):
        if N % tm == 0:
            return tm
    return N


def relative_bucketed_time_and_position_bias(all_timestamps, pos_w, ts_w,
                                             *, max_seq_len, num_buckets,
                                             tile_m=None, out_dtype=jnp.float32):
    """Equivalent of RelativeBucketedTimeAndPositionBasedBias.forward -> (B, N, N)."""
    B, N = all_timestamps.shape
    assert N == max_seq_len
    K = num_buckets + 1
    TM = _pick_tile_m(N, tile_m)
    num_m = N // TM

    # ---- Glue (plain JAX, batch-invariant / O(N^2) or cheaper) ----
    ts = all_timestamps.astype(jnp.int32)
    ext = jnp.concatenate([ts, ts[:, N - 1:N]], axis=1)          # (B, N+1)
    ts_next = ext[:, 1:].reshape(B, N, 1)                        # ext[:, i+1]
    ts_prev = ext[:, :-1].reshape(B, 1, N)                       # ext[:, j]

    # Batch-invariant Toeplitz positional bias: rel_pos[i, j] = pos_w[j - i + N - 1]
    i = jnp.arange(N, dtype=jnp.int32)[:, None]
    j = jnp.arange(N, dtype=jnp.int32)[None, :]
    rel_pos = pos_w.astype(jnp.float32)[j - i + (N - 1)]         # (N, N)

    ts_w_f32 = ts_w.astype(jnp.float32).reshape(K)               # (K,) -> SMEM

    return pl.pallas_call(
        _bias_kernel,
        out_shape=jax.ShapeDtypeStruct((B, N, N), out_dtype),
        grid=(num_m, B),   # batch is the inner axis so rel_pos stays VMEM-resident
        in_specs=[
            pl.BlockSpec(memory_space=pltpu.MemorySpace.SMEM),            # ts_w
            pl.BlockSpec((1, TM, 1), lambda m, b: (b, m, 0)),             # ts_next
            pl.BlockSpec((1, 1, N), lambda m, b: (b, 0, 0)),              # ts_prev
            pl.BlockSpec((TM, N), lambda m, b: (m, 0)),                   # rel_pos
        ],
        out_specs=pl.BlockSpec((1, TM, N), lambda m, b: (b, m, 0)),
        compiler_params=pltpu.CompilerParams(
            dimension_semantics=("parallel", "parallel")),
    )(ts_w_f32, ts_next, ts_prev, rel_pos)


def _reference(all_timestamps, pos_w, ts_w, N, num_buckets):
    """Pure-JAX reference mirroring the PyTorch forward."""
    ts = all_timestamps.astype(jnp.int32)
    ext = jnp.concatenate([ts, ts[:, N - 1:N]], axis=1)
    diff = ext[:, 1:, None] - ext[:, None, :-1]
    mag = jnp.maximum(jnp.abs(diff).astype(jnp.float32), 1.0)
    bucket = jnp.clip(
        jnp.floor(jnp.log(mag) / _TIME_BUCKET_INCR).astype(jnp.int32),
        0, num_buckets)
    rel_ts = ts_w.astype(jnp.float32)[bucket]
    i = jnp.arange(N)[:, None]
    j = jnp.arange(N)[None, :]
    rel_pos = pos_w.astype(jnp.float32)[j - i + N - 1]
    return rel_pos[None] + rel_ts


if __name__ == "__main__":
    B, N, num_buckets = 2, 128, 8   # N multiple of 128 -> lane-dense output stores

    key = jax.random.PRNGKey(0)
    k_ts, k_posw, k_tsw = jax.random.split(key, 3)

    # Deterministic "parameters" (normal, std=0.02, as in __init__).
    pos_w = 0.02 * jax.random.normal(k_posw, (2 * N - 1,), dtype=jnp.float32)
    ts_w = 0.02 * jax.random.normal(k_tsw, (num_buckets + 1,), dtype=jnp.float32)

    # Deterministic timestamps, sorted along the sequence axis.
    base = jax.random.randint(k_ts, (B, N), 0, 100_000, dtype=jnp.int32)
    all_timestamps = jnp.sort(base, axis=1)

    out = relative_bucketed_time_and_position_bias(
        all_timestamps, pos_w, ts_w,
        max_seq_len=N, num_buckets=num_buckets, tile_m=64)  # grid = (2, 2)
    out = jax.block_until_ready(out)

    ref = _reference(all_timestamps, pos_w, ts_w, N, num_buckets)
    np.testing.assert_allclose(np.asarray(out), np.asarray(ref),
                               rtol=1e-5, atol=1e-6)
    print("KERNEL_OK")
</pallas_src>

<mosaic_0001>
module attributes {stable_mosaic.version = 11 : i64} {
  func.func @_bias_kernel(%arg0: i32, %arg1: i32, %arg2: memref<9xf32, #tpu.memory_space<smem>>, %arg3: memref<1x64x1xi32, #tpu.memory_space<vmem>>, %arg4: memref<1x1x128xi32, #tpu.memory_space<vmem>>, %arg5: memref<64x128xf32, #tpu.memory_space<vmem>>, %arg6: memref<1x64x128xf32, #tpu.memory_space<vmem>>) attributes {dimension_semantics = [#tpu.dimension_semantics<parallel>, #tpu.dimension_semantics<parallel>], iteration_bounds = array<i64: 2, 2>, scalar_prefetch = 0 : i64, scratch_operands = 0 : i64, tpu.core_type = #tpu.core_type<tc>, window_params = [{transform_indices = @transform_0, window_bounds = array<i64: 9>}, {transform_indices = @transform_1, window_bounds = array<i64: 1, 64, 1>}, {transform_indices = @transform_2, window_bounds = array<i64: 1, 1, 128>}, {transform_indices = @transform_3, window_bounds = array<i64: 64, 128>}, {transform_indices = @transform_4, window_bounds = array<i64: 1, 64, 128>}]} {
    %c0 = arith.constant 0 : index
    %c0_0 = arith.constant 0 : index
    %c0_1 = arith.constant 0 : index
    %0 = vector.load %arg3[%c0, %c0_0, %c0_1] : memref<1x64x1xi32, #tpu.memory_space<vmem>>, vector<1x64x1xi32>
    %1 = vector.shape_cast %0 : vector<1x64x1xi32> to vector<64x1xi32>
    %c0_2 = arith.constant 0 : index
    %c0_3 = arith.constant 0 : index
    %c0_4 = arith.constant 0 : index
    %2 = vector.load %arg4[%c0_2, %c0_3, %c0_4] : memref<1x1x128xi32, #tpu.memory_space<vmem>>, vector<1x1x128xi32>
    %3 = vector.shape_cast %2 : vector<1x1x128xi32> to vector<1x128xi32>
    %4 = vector.broadcast %1 : vector<64x1xi32> to vector<64x128xi32>
    %5 = vector.broadcast %3 : vector<1x128xi32> to vector<64x128xi32>
    %6 = arith.subi %4, %5 : vector<64x128xi32>
    %7 = math.absi %6 : vector<64x128xi32>
    %8 = arith.sitofp %7 : vector<64x128xi32> to vector<64x128xf32>
    %cst = arith.constant 1.000000e+00 : f32
    %9 = vector.broadcast %cst : f32 to vector<64x128xf32>
    %10 = arith.maximumf %8, %9 : vector<64x128xf32>
    %11 = math.log %10 : vector<64x128xf32>
    %cst_5 = arith.constant 3.010000e-01 : f32
    %12 = vector.broadcast %cst_5 : f32 to vector<64x128xf32>
    %13 = arith.divf %11, %12 : vector<64x128xf32>
    %14 = math.floor %13 : vector<64x128xf32>
    %15 = arith.fptosi %14 : vector<64x128xf32> to vector<64x128xi32>
    %c0_i32 = arith.constant 0 : i32
    %c8_i32 = arith.constant 8 : i32
    %16 = vector.broadcast %c0_i32 : i32 to vector<64x128xi32>
    %17 = arith.maxsi %16, %15 : vector<64x128xi32>
    %18 = vector.broadcast %c8_i32 : i32 to vector<64x128xi32>
    %19 = arith.minsi %18, %17 : vector<64x128xi32>
    %cst_6 = arith.constant 0.000000e+00 : f32
    %20 = vector.broadcast %cst_6 : f32 to vector<64x128xf32>
    %c0_i32_7 = arith.constant 0 : i32
    %21 = vector.broadcast %c0_i32_7 : i32 to vector<64x128xi32>
    %22 = arith.cmpi eq, %19, %21 : vector<64x128xi32>
    %c0_8 = arith.constant 0 : index
    %23 = memref.load %arg2[%c0_8] : memref<9xf32, #tpu.memory_space<smem>>
    %24 = vector.broadcast %23 : f32 to vector<64x128xf32>
    %25 = arith.select %22, %24, %20 : vector<64x128xi1>, vector<64x128xf32>
    %c1_i32 = arith.constant 1 : i32
    %26 = vector.broadcast %c1_i32 : i32 to vector<64x128xi32>
    %27 = arith.cmpi eq, %19, %26 : vector<64x128xi32>
    %c1 = arith.constant 1 : index
    %28 = memref.load %arg2[%c1] : memref<9xf32, #tpu.memory_space<smem>>
    %29 = vector.broadcast %28 : f32 to vector<64x128xf32>
    %30 = arith.select %27, %29, %25 : vector<64x128xi1>, vector<64x128xf32>
    %c2_i32 = arith.constant 2 : i32
    %31 = vector.broadcast %c2_i32 : i32 to vector<64x128xi32>
    %32 = arith.cmpi eq, %19, %31 : vector<64x128xi32>
    %c2 = arith.constant 2 : index
    %33 = memref.load %arg2[%c2] : memref<9xf32, #tpu.memory_space<smem>>
    %34 = vector.broadcast %33 : f32 to vector<64x128xf32>
    %35 = arith.select %32, %34, %30 : vector<64x128xi1>, vector<64x128xf32>
    %c3_i32 = arith.constant 3 : i32
    %36 = vector.broadcast %c3_i32 : i32 to vector<64x128xi32>
    %37 = arith.cmpi eq, %19, %36 : vector<64x128xi32>
    %c3 = arith.constant 3 : index
    %38 = memref.load %arg2[%c3] : memref<9xf32, #tpu.memory_space<smem>>
    %39 = vector.broadcast %38 : f32 to vector<64x128xf32>
    %40 = arith.select %37, %39, %35 : vector<64x128xi1>, vector<64x128xf32>
    %c4_i32 = arith.constant 4 : i32
    %41 = vector.broadcast %c4_i32 : i32 to vector<64x128xi32>
    %42 = arith.cmpi eq, %19, %41 : vector<64x128xi32>
    %c4 = arith.constant 4 : index
    %43 = memref.load %arg2[%c4] : memref<9xf32, #tpu.memory_space<smem>>
    %44 = vector.broadcast %43 : f32 to vector<64x128xf32>
    %45 = arith.select %42, %44, %40 : vector<64x128xi1>, vector<64x128xf32>
    %c5_i32 = arith.constant 5 : i32
    %46 = vector.broadcast %c5_i32 : i32 to vector<64x128xi32>
    %47 = arith.cmpi eq, %19, %46 : vector<64x128xi32>
    %c5 = arith.constant 5 : index
    %48 = memref.load %arg2[%c5] : memref<9xf32, #tpu.memory_space<smem>>
    %49 = vector.broadcast %48 : f32 to vector<64x128xf32>
    %50 = arith.select %47, %49, %45 : vector<64x128xi1>, vector<64x128xf32>
    %c6_i32 = arith.constant 6 : i32
    %51 = vector.broadcast %c6_i32 : i32 to vector<64x128xi32>
    %52 = arith.cmpi eq, %19, %51 : vector<64x128xi32>
    %c6 = arith.constant 6 : index
    %53 = memref.load %arg2[%c6] : memref<9xf32, #tpu.memory_space<smem>>
    %54 = vector.broadcast %53 : f32 to vector<64x128xf32>
    %55 = arith.select %52, %54, %50 : vector<64x128xi1>, vector<64x128xf32>
    %c7_i32 = arith.constant 7 : i32
    %56 = vector.broadcast %c7_i32 : i32 to vector<64x128xi32>
    %57 = arith.cmpi eq, %19, %56 : vector<64x128xi32>
    %c7 = arith.constant 7 : index
    %58 = memref.load %arg2[%c7] : memref<9xf32, #tpu.memory_space<smem>>
    %59 = vector.broadcast %58 : f32 to vector<64x128xf32>
    %60 = arith.select %57, %59, %55 : vector<64x128xi1>, vector<64x128xf32>
    %c8_i32_9 = arith.constant 8 : i32
    %61 = vector.broadcast %c8_i32_9 : i32 to vector<64x128xi32>
    %62 = arith.cmpi eq, %19, %61 : vector<64x128xi32>
    %c8 = arith.constant 8 : index
    %63 = memref.load %arg2[%c8] : memref<9xf32, #tpu.memory_space<smem>>
    %64 = vector.broadcast %63 : f32 to vector<64x128xf32>
    %65 = arith.select %62, %64, %60 : vector<64x128xi1>, vector<64x128xf32>
    %c0_10 = arith.constant 0 : index
    %c0_11 = arith.constant 0 : index
    %66 = vector.load %arg5[%c0_10, %c0_11] : memref<64x128xf32, #tpu.memory_space<vmem>>, vector<64x128xf32>
    %67 = arith.addf %66, %65 : vector<64x128xf32>
    %c0_12 = arith.constant 0 : index
    %c0_13 = arith.constant 0 : index
    %c0_14 = arith.constant 0 : index
    %68 = vector.load %arg6[%c0_12, %c0_13, %c0_14] : memref<1x64x128xf32, #tpu.memory_space<vmem>>, vector<1x64x128xf32>
    %69 = vector.shape_cast %68 : vector<1x64x128xf32> to vector<64x128xf32>
    %70 = vector.shape_cast %67 : vector<64x128xf32> to vector<1x64x128xf32>
    tpu.vector_store %arg6[%c0_12, %c0_13, %c0_14], %70 {strides = array<i32>} : memref<1x64x128xf32, #tpu.memory_space<vmem>>, vector<1x64x128xf32>,
    return
  }
  func.func @transform_0(%arg0: i32, %arg1: i32) -> i32 {
    %c0_i32 = arith.constant 0 : i32
    %c0_i32_0 = arith.constant 0 : i32
    return %c0_i32 : i32
  }
  func.func @transform_1(%arg0: i32, %arg1: i32) -> (i32, i32, i32) {
    %c0_i32 = arith.constant 0 : i32
    %c0_i32_0 = arith.constant 0 : i32
    return %arg1, %arg0, %c0_i32 : i32, i32, i32
  }
  func.func @transform_2(%arg0: i32, %arg1: i32) -> (i32, i32, i32) {
    %c0_i32 = arith.constant 0 : i32
    %c0_i32_0 = arith.constant 0 : i32
    %c0_i32_1 = arith.constant 0 : i32
    return %arg1, %c0_i32, %c0_i32_0 : i32, i32, i32
  }
  func.func @transform_3(%arg0: i32, %arg1: i32) -> (i32, i32) {
    %c0_i32 = arith.constant 0 : i32
    %c0_i32_0 = arith.constant 0 : i32
    return %arg0, %c0_i32 : i32, i32
  }
  func.func @transform_4(%arg0: i32, %arg1: i32) -> (i32, i32, i32) {
    %c0_i32 = arith.constant 0 : i32
    %c0_i32_0 = arith.constant 0 : i32
    return %arg1, %arg0, %c0_i32 : i32, i32, i32
  }
}

</mosaic_0001>

<bundles_post_ra>
// kernel: tpu_custom_call.1
= control target key start
LH: loop header
LB: loop body
LE: loop exit
PB: predicated region body
PF: predicated region fallthrough
CT: control target
= control target key end

     0   :  { %9 = vsyncpa [#allocation4], 0  ;;  %s1360_s0 = inlined_call_operand.vmem [shape: f32[9], index: 0, kind: input, shape index: {}]   ;;  %s1361_s1 = inlined_call_operand.vmem [shape: s32[2,128,1], index: 1, kind: input, shape index: {}]   ;;  %s1362_s2 = inlined_call_operand.vmem [shape: s32[2,1,128], index: 2, kind: input, shape index: {}]   ;;  %s1363_s3 = inlined_call_operand.vmem [shape: f32[128,128], index: 3, kind: input, shape index: {}]   ;;  %s1364_s4 = inlined_call_operand.hbm [shape: f32[2,128,128], index: 4, kind: output, shape index: {}]  }
   0x1   :  { %10 = vsyncpa [#allocation3], 0 }
   0x2   :  { %12 = vsyncpa [#allocation3 + $0x1], 0  ;;  %s1050_s15 = smov 0   ;;  %s1052_s16 = smov 0  }
   0x3   :  { %s1054_s17 = smov 0   ;;  %s1056_s18 = smov 0  }
   0x4   :  { %s1058_s19 = smov 0   ;;  %s1060_s20 = smov 0  }
   0x5   :  { %s1062_s21 = smov 0   ;;  %s1064_s22 = smov 0  }
   0x6 LB: > { %s752_s23 = sadd.s32 4294967295, %s1018_s22   ;;  %s753_s24 = sadd.s32 4294967294, %s1018_s22   ;;  %s1018_s22 = sphi %s1064_s22, %s18_s22   ;;  %s1014_s21 = sphi %s1062_s21, %s1376_s21   ;;  %s1010_s20 = sphi %s1060_s20, %s1375_s20   ;;  %s1006_s19 = sphi %s1058_s19, %s1374_s19   ;;  %s1002_s18 = sphi %s1056_s18, %s1373_s18   ;;  %s998_s17 = sphi %s1054_s17, %s1372_s17   ;;  %s994_s16 = sphi %s1052_s16, %s1371_s16   ;;  %s990_s15 = sphi %s1050_s15, %s1370_s15  }
   0x7   : > { %s27_s25 = sadd.s32 1, %s1010_s20  ;;  %s30_s26 = sadd.s32 1, %s1014_s21 }
   0x8   : > { %p28_p0 = scmp.ge.s32.totalorder %s27_s25, 2  ;;  %s140_s27 = sadd.s32 1, %s998_s17 }
   0x9   : > { %p150_p1 = scmp.ne.s32.totalorder %s998_s17, %s994_s16  ;;  %p151_p2 = scmp.eq.s32.totalorder %s752_s23, 3 }
   0xa   : > { %s1378_s25 = smov (%p28_p0, %s27_s25), 0  ;;  %s1380_s26 = smov (!%p28_p0, %s30_s26), %s1014_s21 }
   0xb   : > { %s135_s28 = ssub.s32 %s1010_s20, %s1378_s25  ;;  %p1102_p3 = por %p151_p2, %p150_p1 }
   0xc   : > { %p32_p4 = scmp.ge.s32.totalorder %s1380_s26, 2  ;;  %p156_p5 = scmp.ne.s32.totalorder %s994_s16, %s990_s15 }
   0xd   : > { %p157_p6 = scmp.eq.s32.totalorder %s753_s24, 3  ;;  %p754_p7 = scmp.ge.s32.totalorder %s1018_s22, 1 }
   0xe   : > { %s1382_s26 = smov (%p32_p4, %s1380_s26), 0  ;;  %p164_p9 = scmp.lt.s32.totalorder %s1018_s22, 5 }
   0xf   : > { %p1111_p8 = por %p157_p6, %p156_p5  ;;  %s136_s5 = ssub.s32 %s1014_s21, %s1382_s26 }
  0x10   : > { %s137_s6 = sor.u32 %s136_s5, %s135_s28  ;;  %p1118_p10 = pnand %p754_p7, %p164_p9 }
  0x11   : > { %s1366_s30 = scalar_select %p1111_p8, 1, 0 }
  0x12   : > { %p138_p11 = scmp.eq.s32.totalorder %s137_s6, 0  ;;  %p1122_p12 = scmp.eq.s32.totalorder %s752_s23, 0 }
  0x13   : > { %p810_p13 = pneg %p1118_p10  ;;  %s177_s11 = sshll.u32 %s1360_s0, 4  ;;  %s178_s11 = int_to_ptr.vmem [resolvable:$true] %s177_s11 }
  0x14   : > { %s1132_s12 = scalar_select %p138_p11, %s998_s17, %s140_s27  }
  0x15   : > { %p811_p0 = pnand %p1122_p12, %p810_p13  ;;  %s907_s13 = scalar_lea.vmem %s178_s11, 16 }
  0x16   : > { %p908_p1 = scmp.ne.s32.totalorder %s178_s11, %s907_s13  ;;  %p915_p6 = scmp.lt.s32.totalorder %s178_s11, %s178_s11 }
  0x17   : > { %p909_p2 = pneg %p811_p0  ;;  %p916_p7 = scmp.lt.s32.totalorder %s907_s13, %s907_s13 }
  0x19   : > { %p910_p4 = pnand %p909_p2, %p908_p1  ;;  %p917_p9 = por %p916_p7, %p915_p6 }
  0x1b   : > { %p911_p5 = pneg %p910_p4 }
  0x1d   : > { %p918_p8 = pnand %p917_p9, %p911_p5 }
  0x1f   : > { %921 = shalt.err (!%p918_p8)
}
  0x20   : > { %s1020_s14 = smov [#allocation2]   ;;  %218 = sbr.rel (%p1118_p10) target bundleno = 277 (0x115), region = 36 }
  0x21   : > { %813 = dma.vmem_to_smem (!%p811_p0), %s178_s11, 16, %s1020_s14, [#allocation4]  }
  0x25   : > { %981 = dma.done.wait (%p1122_p12), [#allocation4], 16  }
  0x26   : > { %983 = vsyncadd (%p1122_p12), [#allocation4], 4294967280 }
  0x27   : > { %224 = sfence }
  0x28   : > { %s1143_s23 = sshll.u32 %s1006_s19, 3  ;;  %p258_p8 = scmp.lt.s32.totalorder %s1002_s18, 1  ;;  %v1021_v0 = vmov 0  }
  0x29   : > { %890 = vset.pattern.permute.xlu1 %v1021_v0  ;;  %889 = vset.pattern.permute.xlu0 %v1021_v0  ;;  %p260_p11 = scmp.lt.s32.totalorder %s1143_s23, 15  ;;  %s443_s13 = sld [smem:[#allocation2]] }
  0x2a   : > { %s259_s24 = scalar_select %p258_p8, %s1002_s18, 1 }
  0x2b   : > { %s1149_s27 = scalar_select %p260_p11, %s1143_s23, 15 }
  0x2c   : > { %s761_s28 = sshll.u32 %s259_s24, 4  ;;  %s269_s11 = scalar_lea.vmem %s1362_s2, %s259_s24 }
  0x2d   : > { %s263_s5 = sadd.s32 %s761_s28, %s1149_s27  ;;  %v765_v9 = vld [vmem:[%s269_s11] ss:$0 sm:$0xff]  ;;  %s774_s14 = sld [smem:[#allocation2 + $0x1]] }
  0x2e   : > { %s762_s6 = sshll.u32 %s263_s5, 3  ;;  %s775_s24 = sld [smem:[#allocation2 + $0x2]] }
  0x2f   : > { %s265_s9 = scalar_lea.vmem %s1361_s1, %s762_s6  ;;  %s776_s28 = sld [smem:[#allocation2 + $0x3]]  ;;  %v1158_v61 = vstv %s443_s13 }
  0x30   : > { %v279_v1 = vld [vmem:[%s265_s9 + $0x10] sm:$0xff]  ;;  %v277_v2 = vld [vmem:[%s265_s9] sm:$0xff]  ;;  %v280_v3 = vld [vmem:[%s265_s9 + $0x18] sm:$0xff]  ;;  %s777_s5 = sld [smem:[#allocation2 + $0x4]]  ;;  %s764_s19 = sshll.u32 %s1149_s27, 3 }
  0x31   : > { %293 = vperm.xlu1 %890, %v279_v1   ;;  %287 = vperm.xlu0 %889, %v277_v2   ;;  %v278_v4 = vld [vmem:[%s265_s9 + $0x8] sm:$0xff]  ;;  %v281_v6 = vld [vmem:[%s265_s9 + $0x20] sm:$0xff]  ;;  %v284_v7 = vld [vmem:[%s265_s9 + $0x38] sm:$0xff]  ;;  %s778_s6 = sld [smem:[#allocation2 + $0x5]]  ;;  %s254_s10 = sand.u32 1, %s994_s16  }
  0x32   : > { %v282_v5 = vld [vmem:[%s265_s9 + $0x28] sm:$0xff]  ;;  %v283_v8 = vld [vmem:[%s265_s9 + $0x30] sm:$0xff]  ;;  %s779_s7 = sld [smem:[#allocation2 + $0x6]]  ;;  %s1189_s27 = scalar_lea.vmem %s1363_s3, %s764_s19 }
  0x33   : > { %s780_s8 = sld [smem:[#allocation2 + $0x7]]  ;;  %v1160_v0 = vstv %s774_s14  ;;  %s759_s14 = sshll.u32 %s254_s10, 6 }
  0x34   : > { %s781_s9 = sld [smem:[#allocation2 + $0x8]]  ;;  %s1022_s11 = smov [#allocation5]  }
  0x35   : > { %296 = vperm.xlu1 %890, %v280_v3   ;;  %290 = vperm.xlu0 %889, %v278_v4   ;;  %v1162_v4 = vstv %s775_s24  ;;  %s1217_s24 = scalar_lea.vmem [#allocation5], %s759_s14  ;;  %s926_s13 = sshll.u32 %s1022_s11, 4  ;;  %s927_s13 = int_to_ptr.vmem [resolvable:$false] %s926_s13 }
  0x39   : > { %302 = vperm.xlu1 %890, %v282_v5   ;;  %299 = vperm.xlu0 %889, %v281_v6   ;;  %v1164_v5 = vstv %s776_s28  ;;  %s784_s28 = sshll.u32 %s1002_s18, 4 }
  0x3d   : > { %308 = vperm.xlu1 %890, %v284_v7   ;;  %305 = vperm.xlu0 %889, %v283_v8   ;;  %v1166_v8 = vstv %s777_s5  ;;  %s634_s5 = sadd.s32 %s784_s28, %s1143_s23  ;;  %s637_s23 = sshll.u32 %s1217_s24, 4  ;;  %s1304_s23 = int_to_ptr.vmem [resolvable:$true] %s637_s23 }
  0x3e   : > { %s785_s18 = sshll.u32 %s634_s5, 7  ;;  %s922_s19 = scalar_lea.vmem %s1304_s23, 1024 }
  0x3f   : > { %p923_p10 = scmp.ne.s32.totalorder %s1304_s23, %s922_s19  ;;  %p929_p0 = scmp.lt.s32.totalorder %s1304_s23, %s927_s13 }
  0x41   : > { %p924_p12 = pnand %p923_p10, %p1102_p3 }
  0x43   : > { %p925_p13 = pneg %p924_p12 }
  0xac   : > { %v294_v10 = vpop.permute.xlu1 %293  ;;  %v288_v11 = vpop.permute.xlu0 %287 }
  0xad   : > { %v316_v12 = vsub.s32 %v294_v10, %v765_v9  ;;  %v314_v13 = vsub.s32 %v288_v11, %v765_v9 }
  0xaf   : > { %v329_v14 = vsub.s32 0, %v316_v12  ;;  %v323_v15 = vsub.s32 0, %v314_v13 }
  0xb0   : > { %v297_v16 = vpop.permute.xlu1 %296  ;;  %v291_v17 = vpop.permute.xlu0 %290 }
  0xb1   : > { %v768_v18 = vmin.u32 %v329_v14, %v316_v12  ;;  %v766_v19 = vmin.u32 %v323_v15, %v314_v13  ;;  %v317_v20 = vsub.s32 %v297_v16, %v765_v9  ;;  %v315_v21 = vsub.s32 %v291_v17, %v765_v9 }
  0xb2   : > { %v1168_v12 = vstv %s778_s6  ;;  %v1170_v13 = vstv %s779_s7  ;;  %v1172_v17 = vstv %s780_s8  ;;  %s1299_s8 = scalar_lea.hbm %s1364_s4, %s785_s18 }
  0xb3   : > { %v348_v22 = vcvt.s32.f32 %v768_v18  ;;  %v346_v23 = vcvt.s32.f32 %v766_v19  ;;  %v332_v24 = vsub.s32 0, %v317_v20  ;;  %v326_v25 = vsub.s32 0, %v315_v21 }
  0xb4   : > { %v303_v26 = vpop.permute.xlu1 %302  ;;  %v300_v27 = vpop.permute.xlu0 %299 }
  0xb5   : > { %v356_v28 = vmax.f32 %v348_v22, 1.0  ;;  %v354_v29 = vmax.f32 %v346_v23, 1.0  ;;  %v769_v30 = vmin.u32 %v332_v24, %v317_v20  ;;  %v767_v31 = vmin.u32 %v326_v25, %v315_v21 }
  0xb6   : > { %v319_v32 = vsub.s32 %v303_v26, %v765_v9  ;;  %v318_v33 = vsub.s32 %v300_v27, %v765_v9  ;;  %v1174_v22 = vstv %s781_s9  ;;  %s1309_s9 = scalar_lea.sflag [#allocation3], %s254_s10 }
  0xb7   : > { %891 = vlog2.f32 %v356_v28  ;;  %v349_v34 = vcvt.s32.f32 %v769_v30  ;;  %v347_v35 = vcvt.s32.f32 %v767_v31 }
  0xb8   : > { %893 = vlog2.f32 %v354_v29  ;;  %v338_v36 = vsub.s32 0, %v319_v32  ;;  %v335_v37 = vsub.s32 0, %v318_v33  ;;  %v309_v38 = vpop.permute.xlu1 %308  ;;  %v306_v43 = vpop.permute.xlu0 %305 }
  0xb9   : > { %v357_v39 = vmax.f32 %v349_v34, 1.0  ;;  %v355_v40 = vmax.f32 %v347_v35, 1.0  ;;  %v321_v44 = vsub.s32 %v309_v38, %v765_v9  ;;  %v320_v47 = vsub.s32 %v306_v43, %v765_v9 }
  0xba   : > { %v771_v41 = vmin.u32 %v338_v36, %v319_v32  ;;  %v770_v42 = vmin.u32 %v335_v37, %v318_v33 }
  0xbb   : > { %895 = vlog2.f32 %v357_v39  ;;  %v344_v50 = vsub.s32 0, %v321_v44  ;;  %v341_v51 = vsub.s32 0, %v320_v47 }
  0xbc   : > { %897 = vlog2.f32 %v355_v40  ;;  %v351_v45 = vcvt.s32.f32 %v771_v41  ;;  %v350_v46 = vcvt.s32.f32 %v770_v42 }
  0xbd   : > { %v773_v52 = vmin.u32 %v344_v50, %v321_v44  ;;  %v772_v56 = vmin.u32 %v341_v51, %v320_v47  ;;  %v599_v47 = vld [vmem:[%s1189_s27 + $0x10] sm:$0xff] }
  0xbe   : > { %v359_v48 = vmax.f32 %v351_v45, 1.0  ;;  %v358_v49 = vmax.f32 %v350_v46, 1.0 }
  0xbf   : > { %v353_v59 = vcvt.s32.f32 %v773_v52  ;;  %v352_v3 = vcvt.s32.f32 %v772_v56 }
  0xc0   : > { %899 = vlog2.f32 %v359_v48 }
  0xc1   : > { %901 = vlog2.f32 %v358_v49  ;;  %v361_v11 = vmax.f32 %v353_v59, 1.0  ;;  %v360_v20 = vmax.f32 %v352_v3, 1.0 }
  0xc3   : > { %903 = vlog2.f32 %v361_v11 }
  0xc4   : > { %v892_v53 = vpop.eup %891  ;;  %905 = vlog2.f32 %v360_v20 }
  0xc5   : > { %v894_v54 = vpop.eup %893  ;;  %v367_v55 = vmul.f32 0.6931472, %v892_v53 }
  0xc6   : > { %v363_v57 = vmul.f32 0.6931472, %v894_v54 }
  0xc7   : > { %v381_v58 = vmul.f32 3.3222592, %v367_v55 }
  0xc8   : > { %v896_v60 = vpop.eup %895  ;;  %v379_v62 = vmul.f32 3.3222592, %v363_v57 }
  0xc9   : > { %v898_v63 = vpop.eup %897  ;;  %v389_v1 = vfloor.f32 %v381_v58  ;;  %v369_v2 = vmul.f32 0.6931472, %v896_v60  ;;  %v597_v58 = vld [vmem:[%s1189_s27] sm:$0xff] }
  0xca   : > { %v387_v6 = vfloor.f32 %v379_v62  ;;  %v365_v7 = vmul.f32 0.6931472, %v898_v63 }
  0xcb   : > { %v792_v9 = vtrunc.f32 %v389_v1  ;;  %v382_v10 = vmul.f32 3.3222592, %v369_v2 }
  0xcc   : > { %v788_v14 = vtrunc.f32 %v387_v6  ;;  %v380_v15 = vmul.f32 3.3222592, %v365_v7 }
  0xcd   : > { %v900_v16 = vpop.eup %899  ;;  %v793_v18 = vcvt.f32.s32 %v792_v9  ;;  %v390_v19 = vfloor.f32 %v382_v10 }
  0xce   : > { %v902_v21 = vpop.eup %901  ;;  %v789_v23 = vcvt.f32.s32 %v788_v14  ;;  %v388_v24 = vfloor.f32 %v380_v15  ;;  %v373_v25 = vmul.f32 0.6931472, %v900_v16 }
  0xcf   : > { %vm407_vm0 = vcmp.gt.s32.totalorder %v793_v18, 0  ;;  %v794_v26 = vtrunc.f32 %v390_v19  ;;  %v371_v27 = vmul.f32 0.6931472, %v902_v21  ;;  %v600_v19 = vld [vmem:[%s1189_s27 + $0x18] sm:$0xff] }
  0xd0   : > { %v408_v28 = vsel %vm407_vm0, %v793_v18, 0  ;;  %vm403_vm1 = vcmp.gt.s32.totalorder %v789_v23, 0  ;;  %v790_v29 = vtrunc.f32 %v388_v24  ;;  %v1176_v30 = vmul.f32 3.3222592, %v373_v25  ;;  %v904_v54 = vpop.eup %903 }
  0xd1   : > { %vm423_vm2 = vcmp.lt.s32.totalorder %v408_v28, 8  ;;  %v404_v31 = vsel %vm403_vm1, %v789_v23, 0  ;;  %v795_v32 = vcvt.f32.s32 %v794_v26  ;;  %v1178_v35 = vmul.f32 3.3222592, %v371_v27  ;;  %v906_v62 = vpop.eup %905 }
  0xd2   : > { %v424_v33 = vsel %vm423_vm2, %v408_v28, 8  ;;  %vm419_vm3 = vcmp.lt.s32.totalorder %v404_v31, 8  ;;  %v791_v34 = vcvt.f32.s32 %v790_v29  ;;  %v392_v36 = vfloor.f32 %v1176_v30 }
  0xd3   : > { %vm437_vm4 = vcmp.eq.s32.totalorder %v424_v33, 0  ;;  %vm455_vm5 = vcmp.eq.s32.totalorder %v424_v33, 1  ;;  %vm473_vm6 = vcmp.eq.s32.totalorder %v424_v33, 2  ;;  %vm491_vm7 = vcmp.eq.s32.totalorder %v424_v33, 3 }
  0xd4   : > { %v447_v37 = vsel %vm437_vm4, %v1158_v61, 0.0  ;;  %vm509_vm8 = vcmp.eq.s32.totalorder %v424_v33, 4  ;;  %vm527_vm9 = vcmp.eq.s32.totalorder %v424_v33, 5  ;;  %vm545_vm10 = vcmp.eq.s32.totalorder %v424_v33, 6 }
  0xd5   : > { %v465_v38 = vsel %vm455_vm5, %v1160_v0, %v447_v37  ;;  %vm563_vm11 = vcmp.eq.s32.totalorder %v424_v33, 7  ;;  %v420_v39 = vsel %vm419_vm3, %v404_v31, 8  ;;  %vm581_vm12 = vcmp.eq.s32.totalorder %v424_v33, 8  ;;  %v598_v33 = vld [vmem:[%s1189_s27 + $0x8] sm:$0xff] }
  0xd6   : > { %v483_v40 = vsel %vm473_vm6, %v1162_v4, %v465_v38  ;;  %vm435_vm13 = vcmp.eq.s32.totalorder %v420_v39, 0  ;;  %vm453_vm14 = vcmp.eq.s32.totalorder %v420_v39, 1  ;;  %vm471_vm15 = vcmp.eq.s32.totalorder %v420_v39, 2 }
  0xd7   : > { %v501_v41 = vsel %vm491_vm7, %v1164_v5, %v483_v40  ;;  %v445_v42 = vsel %vm435_vm13, %v1158_v61, 0.0  ;;  %vm489_vm0 = vcmp.eq.s32.totalorder %v420_v39, 3  ;;  %vm507_vm1 = vcmp.eq.s32.totalorder %v420_v39, 4 }
  0xd8   : > { %v519_v43 = vsel %vm509_vm8, %v1166_v8, %v501_v41  ;;  %v463_v44 = vsel %vm453_vm14, %v1160_v0, %v445_v42  ;;  %vm525_vm2 = vcmp.eq.s32.totalorder %v420_v39, 5  ;;  %vm543_vm3 = vcmp.eq.s32.totalorder %v420_v39, 6 }
  0xd9   : > { %v537_v45 = vsel %vm527_vm9, %v1168_v12, %v519_v43  ;;  %v481_v46 = vsel %vm471_vm15, %v1162_v4, %v463_v44  ;;  %vm561_vm4 = vcmp.eq.s32.totalorder %v420_v39, 7  ;;  %vm409_vm5 = vcmp.gt.s32.totalorder %v795_v32, 0 }
  0xda   : > { %v555_v48 = vsel %vm545_vm10, %v1170_v13, %v537_v45  ;;  %v499_v49 = vsel %vm489_vm0, %v1164_v5, %v481_v46  ;;  %vm405_vm6 = vcmp.gt.s32.totalorder %v791_v34, 0  ;;  %v410_v52 = vsel %vm409_vm5, %v795_v32, 0 }
  0xdb   : > { %v573_v50 = vsel %vm563_vm11, %v1172_v17, %v555_v48  ;;  %v517_v51 = vsel %vm507_vm1, %v1166_v8, %v499_v49  ;;  %v406_v53 = vsel %vm405_vm6, %v791_v34, 0  ;;  %vm425_vm7 = vcmp.lt.s32.totalorder %v410_v52, 8 }
  0xdc   : > { %v591_v55 = vsel %vm581_vm12, %v1174_v22, %v573_v50  ;;  %v535_v56 = vsel %vm525_vm2, %v1168_v12, %v517_v51  ;;  %vm421_vm8 = vcmp.lt.s32.totalorder %v406_v53, 8  ;;  %vm579_vm9 = vcmp.eq.s32.totalorder %v420_v39, 8 }
  0xdd   : > { %v607_v57 = vadd.f32 %v599_v47, %v591_v55  ;;  %v553_v59 = vsel %vm543_vm3, %v1170_v13, %v535_v56  ;;  %v426_v60 = vsel %vm425_vm7, %v410_v52, 8  ;;  %v422_v1 = vsel %vm421_vm8, %v406_v53, 8 }
  0xde   : > { %v571_v63 = vsel %vm561_vm4, %v1172_v17, %v553_v59  ;;  %vm438_vm10 = vcmp.eq.s32.totalorder %v426_v60, 0  ;;  %vm456_vm11 = vcmp.eq.s32.totalorder %v426_v60, 1  ;;  %vm474_vm12 = vcmp.eq.s32.totalorder %v426_v60, 2 }
  0xdf   : > { %615 = vst [vmem:[%s1217_s24 + $0x10] sm:$0xff] %v607_v57  ;;  %v589_v2 = vsel %vm579_vm9, %v1174_v22, %v571_v63  ;;  %v448_v3 = vsel %vm438_vm10, %v1158_v61, 0.0  ;;  %vm492_vm13 = vcmp.eq.s32.totalorder %v426_v60, 3  ;;  %vm510_vm14 = vcmp.eq.s32.totalorder %v426_v60, 4 }
  0xe0   : > { %v605_v6 = vadd.f32 %v597_v58, %v589_v2  ;;  %v466_v7 = vsel %vm456_vm11, %v1160_v0, %v448_v3  ;;  %vm528_vm15 = vcmp.eq.s32.totalorder %v426_v60, 5  ;;  %vm546_vm0 = vcmp.eq.s32.totalorder %v426_v60, 6 }
  0xe1   : > { %v484_v9 = vsel %vm474_vm12, %v1162_v4, %v466_v7  ;;  %vm564_vm1 = vcmp.eq.s32.totalorder %v426_v60, 7  ;;  %vm436_vm2 = vcmp.eq.s32.totalorder %v422_v1, 0  ;;  %vm582_vm3 = vcmp.eq.s32.totalorder %v426_v60, 8  ;;  %v602_v60 = vld [vmem:[%s1189_s27 + $0x28] sm:$0xff] }
  0xe2   : > { %613 = vst [vmem:[%s1217_s24] sm:$0xff] %v605_v6  ;;  %v502_v10 = vsel %vm492_vm13, %v1164_v5, %v484_v9  ;;  %v446_v11 = vsel %vm436_vm2, %v1158_v61, 0.0  ;;  %vm454_vm4 = vcmp.eq.s32.totalorder %v422_v1, 1  ;;  %vm472_vm5 = vcmp.eq.s32.totalorder %v422_v1, 2 }
  0xe3   : > { %v520_v14 = vsel %vm510_vm14, %v1166_v8, %v502_v10  ;;  %v464_v15 = vsel %vm454_vm4, %v1160_v0, %v446_v11  ;;  %vm490_vm6 = vcmp.eq.s32.totalorder %v422_v1, 3  ;;  %vm508_vm7 = vcmp.eq.s32.totalorder %v422_v1, 4 }
  0xe4   : > { %v538_v16 = vsel %vm528_vm15, %v1168_v12, %v520_v14  ;;  %v482_v18 = vsel %vm472_vm5, %v1162_v4, %v464_v15  ;;  %vm526_vm8 = vcmp.eq.s32.totalorder %v422_v1, 5  ;;  %vm544_vm9 = vcmp.eq.s32.totalorder %v422_v1, 6  ;;  %v601_v14 = vld [vmem:[%s1189_s27 + $0x20] sm:$0xff] }
  0xe5   : > { %v556_v20 = vsel %vm546_vm0, %v1170_v13, %v538_v16  ;;  %v500_v21 = vsel %vm490_vm6, %v1164_v5, %v482_v18  ;;  %vm562_vm10 = vcmp.eq.s32.totalorder %v422_v1, 7  ;;  %v798_v25 = vtrunc.f32 %v392_v36 }
  0xe6   : > { %v574_v23 = vsel %vm564_vm1, %v1172_v17, %v556_v20  ;;  %v518_v24 = vsel %vm508_vm7, %v1166_v8, %v500_v21  ;;  %v391_v26 = vfloor.f32 %v1178_v35  ;;  %v377_v29 = vmul.f32 0.6931472, %v904_v54 }
  0xe7   : > { %v592_v27 = vsel %vm582_vm3, %v1174_v22, %v574_v23  ;;  %v536_v28 = vsel %vm526_vm8, %v1168_v12, %v518_v24  ;;  %v375_v31 = vmul.f32 0.6931472, %v906_v62  ;;  %v799_v37 = vcvt.f32.s32 %v798_v25 }
  0xe8   : > { %v608_v32 = vadd.f32 %v600_v19, %v592_v27  ;;  %v554_v34 = vsel %vm544_vm9, %v1170_v13, %v536_v28  ;;  %v796_v38 = vtrunc.f32 %v391_v26  ;;  %vm580_vm11 = vcmp.eq.s32.totalorder %v422_v1, 8 }
  0xe9   : > { %v572_v30 = vsel %vm562_vm10, %v1172_v17, %v554_v34  ;;  %v386_v36 = vmul.f32 3.3222592, %v377_v29  ;;  %v385_v39 = vmul.f32 3.3222592, %v375_v31  ;;  %vm413_vm12 = vcmp.gt.s32.totalorder %v799_v37, 0 }
  0xea   : > { %616 = vst [vmem:[%s1217_s24 + $0x18] sm:$0xff] %v608_v32  ;;  %v590_v35 = vsel %vm580_vm11, %v1174_v22, %v572_v30  ;;  %v797_v40 = vcvt.f32.s32 %v796_v38  ;;  %v414_v42 = vsel %vm413_vm12, %v799_v37, 0 }
  0xeb   : > { %v606_v41 = vadd.f32 %v598_v33, %v590_v35  ;;  %v394_v43 = vfloor.f32 %v386_v36  ;;  %v393_v44 = vfloor.f32 %v385_v39  ;;  %vm429_vm13 = vcmp.lt.s32.totalorder %v414_v42, 8  ;;  %v604_v33 = vld [vmem:[%s1189_s27 + $0x38] sm:$0xff] }
  0xec   : > { %vm411_vm14 = vcmp.gt.s32.totalorder %v797_v40, 0  ;;  %v430_v45 = vsel %vm429_vm13, %v414_v42, 8 }
  0xed   : > { %614 = vst [vmem:[%s1217_s24 + $0x8] sm:$0xff] %v606_v41  ;;  %v412_v46 = vsel %vm411_vm14, %v797_v40, 0  ;;  %v802_v47 = vtrunc.f32 %v394_v43  ;;  %vm440_vm15 = vcmp.eq.s32.totalorder %v430_v45, 0  ;;  %vm458_vm0 = vcmp.eq.s32.totalorder %v430_v45, 1 }
  0xee   : > { %v800_v48 = vtrunc.f32 %v393_v44  ;;  %v450_v49 = vsel %vm440_vm15, %v1158_v61, 0.0  ;;  %vm476_vm1 = vcmp.eq.s32.totalorder %v430_v45, 2  ;;  %vm494_vm2 = vcmp.eq.s32.totalorder %v430_v45, 3 }
  0xef   : > { %vm512_vm3 = vcmp.eq.s32.totalorder %v430_v45, 4  ;;  %v468_v50 = vsel %vm458_vm0, %v1160_v0, %v450_v49  ;;  %vm530_vm4 = vcmp.eq.s32.totalorder %v430_v45, 5  ;;  %vm548_vm5 = vcmp.eq.s32.totalorder %v430_v45, 6 }
  0xf0   : > { %vm427_vm6 = vcmp.lt.s32.totalorder %v412_v46, 8  ;;  %v486_v51 = vsel %vm476_vm1, %v1162_v4, %v468_v50  ;;  %vm566_vm7 = vcmp.eq.s32.totalorder %v430_v45, 7  ;;  %v803_v53 = vcvt.f32.s32 %v802_v47 }
  0xf1   : > { %v428_v52 = vsel %vm427_vm6, %v412_v46, 8  ;;  %v504_v54 = vsel %vm494_vm2, %v1164_v5, %v486_v51  ;;  %v801_v55 = vcvt.f32.s32 %v800_v48  ;;  %vm584_vm10 = vcmp.eq.s32.totalorder %v430_v45, 8 }
  0xf2   : > { %vm439_vm8 = vcmp.eq.s32.totalorder %v428_v52, 0  ;;  %vm457_vm9 = vcmp.eq.s32.totalorder %v428_v52, 1  ;;  %v522_v56 = vsel %vm512_vm3, %v1166_v8, %v504_v54  ;;  %vm475_vm11 = vcmp.eq.s32.totalorder %v428_v52, 2 }
  0xf3   : > { %v449_v57 = vsel %vm439_vm8, %v1158_v61, 0.0  ;;  %v540_v58 = vsel %vm530_vm4, %v1168_v12, %v522_v56  ;;  %vm493_vm12 = vcmp.eq.s32.totalorder %v428_v52, 3  ;;  %vm511_vm13 = vcmp.eq.s32.totalorder %v428_v52, 4 }
  0xf4   : > { %v467_v59 = vsel %vm457_vm9, %v1160_v0, %v449_v57  ;;  %v558_v62 = vsel %vm548_vm5, %v1170_v13, %v540_v58  ;;  %vm529_vm14 = vcmp.eq.s32.totalorder %v428_v52, 5  ;;  %vm547_vm15 = vcmp.eq.s32.totalorder %v428_v52, 6 }
  0xf5   : > { %v485_v63 = vsel %vm475_vm11, %v1162_v4, %v467_v59  ;;  %v576_v1 = vsel %vm566_vm7, %v1172_v17, %v558_v62  ;;  %vm417_vm0 = vcmp.gt.s32.totalorder %v803_v53, 0  ;;  %vm415_vm1 = vcmp.gt.s32.totalorder %v801_v55, 0 }
  0xf6   : > { %v503_v2 = vsel %vm493_vm12, %v1164_v5, %v485_v63  ;;  %v594_v3 = vsel %vm584_vm10, %v1174_v22, %v576_v1  ;;  %v418_v7 = vsel %vm417_vm0, %v803_v53, 0  ;;  %v416_v9 = vsel %vm415_vm1, %v801_v55, 0 }
  0xf7   : > { %v521_v6 = vsel %vm511_vm13, %v1166_v8, %v503_v2  ;;  %v610_v10 = vadd.f32 %v602_v60, %v594_v3  ;;  %vm433_vm2 = vcmp.lt.s32.totalorder %v418_v7, 8  ;;  %vm431_vm3 = vcmp.lt.s32.totalorder %v416_v9, 8 }
  0xf8   : > { %v539_v11 = vsel %vm529_vm14, %v1168_v12, %v521_v6  ;;  %vm565_vm4 = vcmp.eq.s32.totalorder %v428_v52, 7  ;;  %vm583_vm5 = vcmp.eq.s32.totalorder %v428_v52, 8  ;;  %v434_v16 = vsel %vm433_vm2, %v418_v7, 8 }
  0xf9   : > { %v557_v15 = vsel %vm547_vm15, %v1170_v13, %v539_v11  ;;  %618 = vst [vmem:[%s1217_s24 + $0x28] sm:$0xff] %v610_v10  ;;  %vm442_vm6 = vcmp.eq.s32.totalorder %v434_v16, 0  ;;  %vm460_vm7 = vcmp.eq.s32.totalorder %v434_v16, 1  ;;  %v432_v19 = vsel %vm431_vm3, %v416_v9, 8 }
  0xfa   : > { %v575_v18 = vsel %vm565_vm4, %v1172_v17, %v557_v15  ;;  %v452_v21 = vsel %vm442_vm6, %v1158_v61, 0.0  ;;  %vm478_vm8 = vcmp.eq.s32.totalorder %v434_v16, 2  ;;  %vm496_vm9 = vcmp.eq.s32.totalorder %v434_v16, 3 }
  0xfb   : > { %v593_v20 = vsel %vm583_vm5, %v1174_v22, %v575_v18  ;;  %v470_v24 = vsel %vm460_vm7, %v1160_v0, %v452_v21  ;;  %vm441_vm10 = vcmp.eq.s32.totalorder %v432_v19, 0  ;;  %vm514_vm11 = vcmp.eq.s32.totalorder %v434_v16, 4 }
  0xfc   : > { %v609_v23 = vadd.f32 %v601_v14, %v593_v20  ;;  %v488_v25 = vsel %vm478_vm8, %v1162_v4, %v470_v24  ;;  %v451_v27 = vsel %vm441_vm10, %v1158_v61, 0.0  ;;  %vm459_vm12 = vcmp.eq.s32.totalorder %v432_v19, 1 }
  0xfd   : > { %v506_v26 = vsel %vm496_vm9, %v1164_v5, %v488_v25  ;;  %vm532_vm13 = vcmp.eq.s32.totalorder %v434_v16, 5  ;;  %v469_v29 = vsel %vm459_vm12, %v1160_v0, %v451_v27  ;;  %vm477_vm14 = vcmp.eq.s32.totalorder %v432_v19, 2 }
  0xfe   : > { %617 = vst [vmem:[%s1217_s24 + $0x20] sm:$0xff] %v609_v23  ;;  %v524_v28 = vsel %vm514_vm11, %v1166_v8, %v506_v26  ;;  %vm550_vm15 = vcmp.eq.s32.totalorder %v434_v16, 6  ;;  %v487_v32 = vsel %vm477_vm14, %v1162_v4, %v469_v29  ;;  %vm495_vm0 = vcmp.eq.s32.totalorder %v432_v19, 3 }
  0xff   : > { %v542_v31 = vsel %vm532_vm13, %v1168_v12, %v524_v28  ;;  %vm568_vm1 = vcmp.eq.s32.totalorder %v434_v16, 7  ;;  %v505_v61 = vsel %vm495_vm0, %v1164_v5, %v487_v32  ;;  %vm513_vm2 = vcmp.eq.s32.totalorder %v432_v19, 4  ;;  %v603_v5 = vld [vmem:[%s1189_s27 + $0x30] sm:$0xff]  ;;  %s928_s27 = scalar_lea.vmem %s927_s13, 2048 }
 0x100   : > { %v560_v34 = vsel %vm550_vm15, %v1170_v13, %v542_v31  ;;  %vm586_vm3 = vcmp.eq.s32.totalorder %v434_v16, 8  ;;  %v523_v37 = vsel %vm513_vm2, %v1166_v8, %v505_v61  ;;  %vm531_vm4 = vcmp.eq.s32.totalorder %v432_v19, 5  ;;  %p930_p1 = scmp.lt.s32.totalorder %s928_s27, %s922_s19 }
 0x101   : > { %v578_v0 = vsel %vm568_vm1, %v1172_v17, %v560_v34  ;;  %v541_v38 = vsel %vm531_vm4, %v1168_v12, %v523_v37  ;;  %vm549_vm5 = vcmp.eq.s32.totalorder %v432_v19, 6  ;;  %vm567_vm6 = vcmp.eq.s32.totalorder %v432_v19, 7 }
 0x102   : > { %v596_v4 = vsel %vm586_vm3, %v1174_v22, %v578_v0  ;;  %v559_v36 = vsel %vm549_vm5, %v1170_v13, %v541_v38  ;;  %vm585_vm7 = vcmp.eq.s32.totalorder %v432_v19, 8  ;;  %p931_p2 = por %p930_p1, %p929_p0 }
 0x103   : > { %v612_v30 = vadd.f32 %v604_v33, %v596_v4  ;;  %v577_v8 = vsel %vm567_vm6, %v1172_v17, %v559_v36 }
 0x104   : > { %v595_v39 = vsel %vm585_vm7, %v1174_v22, %v577_v8  ;;  %p932_p4 = pnand %p931_p2, %p925_p13 }
 0x105   : > { %620 = vst [vmem:[%s1217_s24 + $0x38] sm:$0xff] %v612_v30  ;;  %v611_v12 = vadd.f32 %v603_v5, %v595_v39 }
 0x107   : > { %619 = vst [vmem:[%s1217_s24 + $0x30] sm:$0xff] %v611_v12 }
 0x108   : > { %935 = shalt.err (!%p932_p4)
}
 0x109   : > { %s936_s10 = scalar_lea.hbm %s1299_s8, 1024  ;;  %s940_s28 = scalar_lea.hbm %s1364_s4, 4096 }
 0x10a   : > { %p937_p5 = scmp.ne.s32.totalorder %s1299_s8, %s936_s10  ;;  %p941_p9 = scmp.lt.s32.totalorder %s1299_s8, %s1364_s4 }
 0x10b   : > { %p942_p8 = scmp.lt.s32.totalorder %s940_s28, %s936_s10 }
 0x10c   : > { %p938_p6 = pnand %p937_p5, %p1102_p3 }
 0x10d   : > { %p943_p11 = por %p942_p8, %p941_p9 }
 0x10e   : > { %p939_p7 = pneg %p938_p6 }
 0x110   : > { %p944_p10 = pnand %p943_p11, %p939_p7 }
 0x112   : > { %947 = shalt.err (!%p944_p10)
}
 0x113   : > { %s1023_s6 = smov 128   ;;  %s1024_s7 = smov 8  }
 0x114   : > { %808 = dma.vmem_to_hbm [thread:$0]  (%p1102_p3), %s1304_s23, 1024, %s1299_s8, %s1309_s9, %s1023_s6, %s1023_s6, %s1024_s7  }
 0x115 PF: > { %p820_p12 = scmp.ge.s32.totalorder %s1018_s22, 2  ;;  %s652_s19 = sand.u32 1, %s990_s15  }
 0x116   : > { %p1369_p13 = scmp.ne.s32.totalorder %s1366_s30, 0  ;;  %s653_s11 = scalar_lea.sflag [#allocation3], %s652_s19 }
 0x118   : > { %p815_p0 = pnand %p820_p12, %p1369_p13 }
 0x11a   : > { %p816_p1 = pneg %p815_p0 }
 0x11c   : > { %985 = dma.done.wait (%p816_p1), %s653_s11, 1024  }
 0x11d   : > { %987 = vsyncadd (%p816_p1), %s653_s11, 4294966272  ;;  %s18_s22 = sadd.s32 1, %s1018_s22   ;;  %s1370_s15 = smov %s994_s16 }
 0x11e   : > { %p15_p2 = scmp.ge.s32.totalorder %s18_s22, 6   ;;  %s1371_s16 = smov %s998_s17 }
 0x11f   : > { %s1372_s17 = smov %s1132_s12  ;;  %s1373_s18 = smov %s1010_s20 }
 0x120   : > { %s1374_s19 = smov %s1014_s21  ;;  %s1375_s20 = smov %s1378_s25 }
 0x121   : > { %s1376_s21 = smov %s1382_s26  ;;  %17 = sbr.rel (!%p15_p2) target bundleno = 6 (0x6), region = 82 }
 0x126   :  { %658 = vsyncpa [#allocation3], 1 }
 0x127   :  { %660 = vsyncpa [#allocation3 + $0x1], 1 }
 0x128   :  { %661 = vsyncpa [#allocation4], 1 }
 0x129   :  { %663 = vsyncpa [#allocation4 + $0x1], 1 }

</bundles_post_ra>
